<compile_context>
chip_gen: v7x
topology: tpu7x:2x2x1
jax: 0.10.0
libtpu: 0.0.40
codegen_flags: <defaults>
</compile_context>

<pallas_src>
import jax
import jax.numpy as jnp
from jax import lax
from jax.experimental import pallas as pl
from jax.experimental.pallas import tpu as pltpu

_EPS = 1e-12  # matches F.normalize default eps


# ----------------------------------------------------------------------------
# Kernel
# ----------------------------------------------------------------------------
def coda_prompt_kernel(x_ref, akt_ref, aat_ref, invk_ref, p_ref, out_ref):
    x = x_ref[...]                                    # (TB, D)  float32
    xc = x.astype(akt_ref.dtype)                      # cast once for MXU dtype

    # num[b,k] = sum_d x[b,d] * A[k,d] * K[k,d]   (AKt is pre-transposed (D,Kp))
    num = jnp.dot(xc, akt_ref[...], preferred_element_type=jnp.float32)   # (TB,Kp)

    # ||x_b ⊙ A_k||^2 = sum_d x[b,d]^2 * A[k,d]^2
    x2 = (x * x).astype(aat_ref.dtype)
    sq = jnp.dot(x2, aat_ref[...], preferred_element_type=jnp.float32)    # (TB,Kp)

    # 1 / max(||x⊙A||, eps)  ==  rsqrt(max(sq, eps^2))  -> EUP, clamps bf16 noise
    inv_q = lax.rsqrt(jnp.maximum(sq, _EPS * _EPS))

    # attention weights; inv_knorm = mask / max(||K||, eps), precomputed (1,Kp)
    aq_k = num * inv_q * invk_ref[...]                                    # (TB,Kp) f32

    # P_flat[b,:] = sum_k aq_k[b,k] * p_flat[k,:]
    out_ref[...] = jnp.dot(aq_k.astype(p_ref.dtype), p_ref[...],
                           preferred_element_type=jnp.float32)


# ----------------------------------------------------------------------------
# Wrapper
# ----------------------------------------------------------------------------
def _vmem_budget_bytes():
    """Per-core VMEM budget with headroom (v5e/v6e: 128 MiB phys, v7x: 64 MiB)."""
    try:
        info = pltpu.get_tpu_info()
        cap = int(getattr(info, "vmem_capacity_bytes", 0) or 0)
        if cap <= 0:
            cap = 32 << 20
    except Exception:
        cap = 32 << 20
    return (cap * 3) // 4


@jax.jit
def coda_prompt_call(x_querry, akt, aat, inv_knorm, p_flat):
    """x_querry: (B, D) f32; akt/aat: (D, Kp); inv_knorm: (1, Kp) f32;
    p_flat: (Kp, L*emb_d).  Returns (B, L*emb_d) f32."""
    B, D = x_querry.shape
    Kp = akt.shape[1]
    out_cols = p_flat.shape[1]
    pb = jnp.dtype(akt.dtype).itemsize

    param_bytes = 2 * D * Kp * pb + Kp * out_cols * pb + Kp * 4

    # --- pick batch tile from the VMEM budget (keeps params resident) -------
    budget = _vmem_budget_bytes()
    # double-buffered x / out tiles + f32 intermediates (num, sq, aq_k) per row
    per_row = 2 * (D * 4 + out_cols * 4) + 3 * Kp * 4
    avail = max(budget - param_bytes - (4 << 20), 1 << 20)
    if B <= 8:
        tb = B                                   # single block, no padding
    else:
        tb = int(min(512, B, max(8, avail // per_row)))
        tb = max(8, (tb // 8) * 8)

    pad = (-B) % tb
    x_in = jnp.pad(x_querry, ((0, pad), (0, 0))) if pad else x_querry
    Bp = B + pad
    grid = (Bp // tb,)

    needed = param_bytes + 2 * tb * (D * 4 + out_cols * 4) + 3 * tb * Kp * 4
    vmem_limit = int(max(min(budget, 128 << 20), needed + (4 << 20)))

    flops = 2 * Bp * D * Kp * 2 + 2 * Bp * Kp * out_cols + 4 * Bp * Kp
    bytes_accessed = (Bp * D * 4 + 2 * D * Kp * pb + Kp * 4
                      + Kp * out_cols * pb + Bp * out_cols * 4)

    out = pl.pallas_call(
        coda_prompt_kernel,
        out_shape=jax.ShapeDtypeStruct((Bp, out_cols), jnp.float32),
        grid_spec=pltpu.PrefetchScalarGridSpec(
            num_scalar_prefetch=0,
            grid=grid,
            in_specs=[
                pl.BlockSpec((tb, D), lambda i: (i, 0)),        # x: batch-tiled
                pl.BlockSpec((D, Kp), lambda i: (0, 0)),        # AKt: resident
                pl.BlockSpec((D, Kp), lambda i: (0, 0)),        # AAt: resident
                pl.BlockSpec((1, Kp), lambda i: (0, 0)),        # inv_knorm
                pl.BlockSpec((Kp, out_cols), lambda i: (0, 0)),  # p_flat: resident
            ],
            out_specs=pl.BlockSpec((tb, out_cols), lambda i: (i, 0)),
        ),
        compiler_params=pltpu.CompilerParams(
            dimension_semantics=("parallel",),
            vmem_limit_bytes=vmem_limit,
        ),
        cost_estimate=pl.CostEstimate(
            flops=int(flops),
            transcendentals=int(Bp * Kp),
            bytes_accessed=int(bytes_accessed),
        ),
    )(x_in, akt, aat, inv_knorm, p_flat)

    return out[:B] if pad else out


# ----------------------------------------------------------------------------
# Module
# ----------------------------------------------------------------------------
class CodaPromptJax:
    """Synthetic, deterministic JAX re-implementation of CodaPrompt (inference)."""

    def __init__(self, emb_d, n_tasks, prompt_param, key_dim=768, seed=0,
                 param_dtype=jnp.float32):
        self.emb_d = emb_d
        self.key_d = key_dim
        self.n_tasks = n_tasks
        self.task_count = 0
        self.e_pool_size = int(prompt_param[0])
        self.e_p_length = int(prompt_param[1])
        self.e_layers = [0, 1, 2, 3, 4]
        self.ortho_mu = prompt_param[2]
        self.param_dtype = param_dtype

        pt = self.e_pool_size // self.n_tasks

        def ortho_rows(key, rows, cols):
            g = jax.random.normal(key, (cols, rows), dtype=jnp.float32)
            q, _ = jnp.linalg.qr(g)          # (cols, rows), orthonormal columns
            return q.T                        # (rows, cols), orthonormal rows

        self.params = {}
        key = jax.random.PRNGKey(seed)
        for e in self.e_layers:
            key, k1, k2, k3 = jax.random.split(key, 4)
            # Like torch gram_schmidt at task_count=0: rows [0, pt) orthonormal,
            # remaining rows zero (unused in inference).
            p = jnp.zeros((self.e_pool_size, self.e_p_length, self.emb_d),
                          jnp.float32)
            p = p.at[:pt].set(
                ortho_rows(k1, pt, self.e_p_length * self.emb_d)
                .reshape(pt, self.e_p_length, self.emb_d))
            K = jnp.zeros((self.e_pool_size, self.key_d), jnp.float32)
            K = K.at[:pt].set(ortho_rows(k2, pt, self.key_d))
            A = jnp.zeros((self.e_pool_size, self.key_d), jnp.float32)
            A = A.at[:pt].set(ortho_rows(k3, pt, self.key_d))
            self.params[e] = (K, A, p)

        self._derived = {}
        self._build_derived()

    def _build_derived(self):
        """Hoisted, task-masked, pre-transposed parameter slabs (static shapes)."""
        pt = self.e_pool_size // self.n_tasks
        f = (self.task_count + 1) * pt
        Kp = self.e_pool_size
        Kp_pad = max(8, -(-Kp // 8) * 8)           # sublane-aligned, static
        mask = (jnp.arange(Kp_pad) < f).astype(jnp.float32)

        for e in self.e_layers:
            K, A, p = self.params[e]

            def pad_rows(t):
                return jnp.pad(t, ((0, Kp_pad - Kp),) + ((0, 0),) * (t.ndim - 1))

            Kpd, Apd, ppd = pad_rows(K), pad_rows(A), pad_rows(p)
            akt = ((Apd * Kpd) * mask[:, None]).T.astype(self.param_dtype)   # (D, Kp_pad)
            aat = ((Apd * Apd) * mask[:, None]).T.astype(self.param_dtype)   # (D, Kp_pad)
            knorm = jnp.sqrt(jnp.sum(Kpd * Kpd, axis=1))
            inv_knorm = (mask / jnp.maximum(knorm, _EPS))[None, :].astype(jnp.float32)
            p_flat = (ppd.reshape(Kp_pad, -1) * mask[:, None]).astype(self.param_dtype)
            self._derived[e] = (akt, aat, inv_knorm, p_flat)

    def process_task_count(self):
        # TODO(synk): gram_schmidt re-orthogonalization of the new task rows is
        # not ported; only the task-window mask of the derived slabs changes.
        self.task_count += 1
        self._build_derived()

    def forward(self, x_querry, l, x_block, train=False, task_id=None):
        # TODO(synk): train-mode detach slicing / ortho_penalty loss not
        # implemented — inference (train=False) path only; loss is 0 here.
        if l not in self.e_layers:
            return None, 0.0, x_block

        akt, aat, inv_knorm, p_flat = self._derived[l]
        B = x_querry.shape[0]
        P_flat = coda_prompt_call(x_querry, akt, aat, inv_knorm, p_flat)
        P_ = P_flat.reshape(B, self.e_p_length, self.emb_d)
        i = self.e_p_length // 2
        Ek = P_[:, :i, :]
        Ev = P_[:, i:, :]
        return [Ek, Ev], 0.0, x_block


def reference_forward(x, K, A, p):
    """Pure-JAX mirror of the PyTorch einsum/normalize math for validation."""
    a_querry = x[:, None, :] * A[None, :, :]                              # bkd
    n_K = K / jnp.maximum(jnp.linalg.norm(K, axis=1, keepdims=True), _EPS)
    q = a_querry / jnp.maximum(jnp.linalg.norm(a_querry, axis=2, keepdims=True), _EPS)
    aq_k = jnp.einsum('bkd,kd->bk', q, n_K)
    return jnp.einsum('bk,kld->bld', aq_k, p)


if __name__ == "__main__":
    # Small, forward-consistent shapes.
    emb_d = 32
    key_dim = 32
    n_tasks = 2
    prompt_param = [8, 8, 0.0]   # pool=8, prompt length=8, ortho_mu=0
    B = 2
    layer = 2

    module = CodaPromptJax(emb_d, n_tasks, prompt_param, key_dim=key_dim, seed=0)

    key = jax.random.PRNGKey(0)
    x_querry = jax.random.normal(key, (B, key_dim), dtype=jnp.float32)
    x_block = jnp.zeros((B, 4, emb_d), jnp.float32)  # passed through untouched

    (p_return, loss, xb) = module.forward(x_querry, layer, x_block, train=False)
    Ek, Ev = p_return
    jax.block_until_ready(Ek)
    jax.block_until_ready(Ev)

    # Validate against pure-JAX reference of the PyTorch math (f32 path).
    K, A, p = module.params[layer]
    f = (module.task_count + 1) * (module.e_pool_size // n_tasks)
    P_ref = reference_forward(x_querry, K[:f], A[:f], p[:f])
    i = module.e_p_length // 2
    assert Ek.shape == (B, i, emb_d) and Ev.shape == (B, module.e_p_length - i, emb_d)
    assert jnp.allclose(Ek, P_ref[:, :i, :], atol=1e-5, rtol=1e-5)
    assert jnp.allclose(Ev, P_ref[:, i:, :], atol=1e-5, rtol=1e-5)

    # bf16 parameter path (MXU-native on v6e/v7x), f32 accumulation: looser tol.
    module_bf16 = CodaPromptJax(emb_d, n_tasks, prompt_param, key_dim=key_dim,
                                seed=0, param_dtype=jnp.bfloat16)
    (pb_return, _, _) = module_bf16.forward(x_querry, layer, x_block, train=False)
    Ek_b, Ev_b = pb_return
    jax.block_until_ready(Ek_b)
    jax.block_until_ready(Ev_b)
    assert jnp.allclose(Ek_b, P_ref[:, :i, :], atol=2e-2, rtol=2e-2)
    assert jnp.allclose(Ev_b, P_ref[:, i:, :], atol=2e-2, rtol=2e-2)

    print("KERNEL_OK")
</pallas_src>

<mosaic_0001>
module attributes {stable_mosaic.version = 11 : i64} {
  func.func @coda_prompt_kernel(%arg0: i32, %arg1: memref<2x32xf32, #tpu.memory_space<vmem>>, %arg2: memref<32x8xf32, #tpu.memory_space<vmem>>, %arg3: memref<32x8xf32, #tpu.memory_space<vmem>>, %arg4: memref<1x8xf32, #tpu.memory_space<vmem>>, %arg5: memref<8x256xf32, #tpu.memory_space<vmem>>, %arg6: memref<2x256xf32, #tpu.memory_space<vmem>>) attributes {dimension_semantics = [#tpu.dimension_semantics<parallel>], iteration_bounds = array<i64: 1>, scalar_prefetch = 0 : i64, scratch_operands = 0 : i64, tpu.core_type = #tpu.core_type<tc>, window_params = [{transform_indices = @transform_0, window_bounds = array<i64: 2, 32>}, {pipeline_mode = #tpu.pipeline_mode<synchronous>, transform_indices = @transform_1, window_bounds = array<i64: 32, 8>}, {pipeline_mode = #tpu.pipeline_mode<synchronous>, transform_indices = @transform_2, window_bounds = array<i64: 32, 8>}, {pipeline_mode = #tpu.pipeline_mode<synchronous>, transform_indices = @transform_3, window_bounds = array<i64: 1, 8>}, {pipeline_mode = #tpu.pipeline_mode<synchronous>, transform_indices = @transform_4, window_bounds = array<i64: 8, 256>}, {transform_indices = @transform_5, window_bounds = array<i64: 2, 256>}]} {
    %c0 = arith.constant 0 : index
    %c0_0 = arith.constant 0 : index
    %0 = vector.load %arg1[%c0, %c0_0] : memref<2x32xf32, #tpu.memory_space<vmem>>, vector<2x32xf32>
    %c0_1 = arith.constant 0 : index
    %c0_2 = arith.constant 0 : index
    %1 = vector.load %arg2[%c0_1, %c0_2] : memref<32x8xf32, #tpu.memory_space<vmem>>, vector<32x8xf32>
    %cst = arith.constant dense<0.000000e+00> : vector<2x8xf32>
    %2 = tpu.matmul %0, %1, %cst {dimension_numbers = #tpu.dot_dimension_numbers<[1], [0], [0], [1], [0, 0, 1, 1], [], []>} : vector<2x32xf32>, vector<32x8xf32>, vector<2x8xf32> -> vector<2x8xf32>
    %3 = arith.mulf %0, %0 : vector<2x32xf32>
    %c0_3 = arith.constant 0 : index
    %c0_4 = arith.constant 0 : index
    %4 = vector.load %arg3[%c0_3, %c0_4] : memref<32x8xf32, #tpu.memory_space<vmem>>, vector<32x8xf32>
    %cst_5 = arith.constant dense<0.000000e+00> : vector<2x8xf32>
    %5 = tpu.matmul %3, %4, %cst_5 {dimension_numbers = #tpu.dot_dimension_numbers<[1], [0], [0], [1], [0, 0, 1, 1], [], []>} : vector<2x32xf32>, vector<32x8xf32>, vector<2x8xf32> -> vector<2x8xf32>
    %cst_6 = arith.constant 1.000000e-24 : f32
    %6 = vector.broadcast %cst_6 : f32 to vector<2x8xf32>
    %7 = arith.maximumf %5, %6 : vector<2x8xf32>
    %8 = math.rsqrt %7 : vector<2x8xf32>
    %9 = arith.mulf %2, %8 : vector<2x8xf32>
    %c0_7 = arith.constant 0 : index
    %c0_8 = arith.constant 0 : index
    %10 = vector.load %arg4[%c0_7, %c0_8] : memref<1x8xf32, #tpu.memory_space<vmem>>, vector<1x8xf32>
    %11 = vector.broadcast %10 : vector<1x8xf32> to vector<2x8xf32>
    %12 = arith.mulf %9, %11 : vector<2x8xf32>
    %c0_9 = arith.constant 0 : index
    %c0_10 = arith.constant 0 : index
    %13 = vector.load %arg5[%c0_9, %c0_10] : memref<8x256xf32, #tpu.memory_space<vmem>>, vector<8x256xf32>
    %cst_11 = arith.constant dense<0.000000e+00> : vector<2x256xf32>
    %14 = tpu.matmul %12, %13, %cst_11 {dimension_numbers = #tpu.dot_dimension_numbers<[1], [0], [0], [1], [0, 0, 1, 1], [], []>} : vector<2x8xf32>, vector<8x256xf32>, vector<2x256xf32> -> vector<2x256xf32>
    %c0_12 = arith.constant 0 : index
    %c0_13 = arith.constant 0 : index
    %15 = vector.load %arg6[%c0_12, %c0_13] : memref<2x256xf32, #tpu.memory_space<vmem>>, vector<2x256xf32>
    tpu.vector_store %arg6[%c0_12, %c0_13], %14 {strides = array<i32>} : memref<2x256xf32, #tpu.memory_space<vmem>>, vector<2x256xf32>,
    return
  }
  func.func @transform_0(%arg0: i32) -> (i32, i32) {
    %c0_i32 = arith.constant 0 : i32
    %c0_i32_0 = arith.constant 0 : i32
    return %arg0, %c0_i32 : i32, i32
  }
  func.func @transform_1(%arg0: i32) -> (i32, i32) {
    %c0_i32 = arith.constant 0 : i32
    %c0_i32_0 = arith.constant 0 : i32
    %c0_i32_1 = arith.constant 0 : i32
    return %c0_i32, %c0_i32_0 : i32, i32
  }
  func.func @transform_2(%arg0: i32) -> (i32, i32) {
    %c0_i32 = arith.constant 0 : i32
    %c0_i32_0 = arith.constant 0 : i32
    %c0_i32_1 = arith.constant 0 : i32
    return %c0_i32, %c0_i32_0 : i32, i32
  }
  func.func @transform_3(%arg0: i32) -> (i32, i32) {
    %c0_i32 = arith.constant 0 : i32
    %c0_i32_0 = arith.constant 0 : i32
    %c0_i32_1 = arith.constant 0 : i32
    return %c0_i32, %c0_i32_0 : i32, i32
  }
  func.func @transform_4(%arg0: i32) -> (i32, i32) {
    %c0_i32 = arith.constant 0 : i32
    %c0_i32_0 = arith.constant 0 : i32
    %c0_i32_1 = arith.constant 0 : i32
    return %c0_i32, %c0_i32_0 : i32, i32
  }
  func.func @transform_5(%arg0: i32) -> (i32, i32) {
    %c0_i32 = arith.constant 0 : i32
    %c0_i32_0 = arith.constant 0 : i32
    return %arg0, %c0_i32 : i32, i32
  }
}

</mosaic_0001>

<bundles_post_ra>
// kernel: coda_prompt_call.1
= control target key start
LH: loop header
LB: loop body
LE: loop exit
PB: predicated region body
PF: predicated region fallthrough
CT: control target
= control target key end

     0   :  { %v371_v3 = vmov 0.0|0.0   ;;  %vm372_vm0 = vmmov 0   ;;  %v373_v6 = vmov 0.0   ;;  %s453_s0 = inlined_call_operand.vmem [shape: f32[2,32], index: 0, kind: input, shape index: {}]   ;;  %s454_s1 = inlined_call_operand.vmem [shape: f32[32,8], index: 1, kind: input, shape index: {}]   ;;  %s455_s2 = inlined_call_operand.vmem [shape: f32[32,8], index: 2, kind: input, shape index: {}]   ;;  %s456_s3 = inlined_call_operand.vmem [shape: f32[1,8], index: 3, kind: input, shape index: {}]   ;;  %s457_s4 = inlined_call_operand.vmem [shape: f32[8,256], index: 4, kind: input, shape index: {}]   ;;  %s458_s5 = inlined_call_operand.hbm [shape: f32[2,256], index: 5, kind: output, shape index: {}]  }
   0x1   :  { %v101_v0 = vld [vmem:[%s455_s2] sm:$0xff]  ;;  %v102_v1 = vld [vmem:[%s455_s2 + $0x8] sm:$0xff]  ;;  %v103_v2 = vld [vmem:[%s455_s2 + $0x10] sm:$0xff]  ;;  %335 = vmatprep.subr.bf16.mxu1 %v371_v3  ;;  %326 = vmatprep.mubr.msk.f32.mxu1 %vm372_vm0, %v373_v6 }
   0x2   :  { %v336_v4 = vpack.c.bf16 %v102_v1, %v101_v0  ;;  %v104_v5 = vld [vmem:[%s455_s2 + $0x18] sm:$0xff]  ;;  %v22_v7 = vld [vmem:[%s454_s1] sm:$0xff]  ;;  %329 = vmatprep.subr.bf16.mxu0 %v371_v3  ;;  %v23_v8 = vld [vmem:[%s454_s1 + $0x8] sm:$0xff]  ;;  %315 = vmatprep.mubr.msk.f32.mxu0 %vm372_vm0, %v373_v6 }
   0x3   :  { %v24_v9 = vld [vmem:[%s454_s1 + $0x10] sm:$0xff]  ;;  %v25_v10 = vld [vmem:[%s454_s1 + $0x18] sm:$0xff]  ;;  %v339_v11 = vpack.c.bf16 %v104_v5, %v103_v2  ;;  %v21_v12 = vld [vmem:[%s453_s0] sm:$0x3]  ;;  %v330_v13 = vpack.c.bf16 %v23_v8, %v22_v7 }
   0x4   :  { %337 = vmatpush3.bf16.msra.mxu1 %v336_v4 }
   0x5   :  { %10 = vsyncpa [#allocation3], 0  ;;  %338 = vmatprep.subr.bf16.mxu1 %v371_v3  ;;  %331 = vmatpush3.bf16.msra.mxu0 %v330_v13  ;;  %v333_v14 = vpack.c.bf16 %v25_v10, %v24_v9  ;;  %v100_v15 = vmul.f32 %v21_v12, %v21_v12  ;;  %vm26_vm1 = vcmask 261120   ;;  %v190_v16 = vld [vmem:[%s457_s4 + $0x8] sm:$0xff]  ;;  %v189_v17 = vld [vmem:[%s457_s4] sm:$0xff]  ;;  %vm191_vm2 = vcmask 64512  }
   0x6   :  { %332 = vmatprep.subr.bf16.mxu0 %v371_v3  ;;  %v294_v24 = vld [vmem:[%s456_s3] ss:$0 sm:$0xff]  ;;  %s374_s14 = smov [#allocation2]  }
   0x7   :  { %s284_s15 = sshll.u32 %s374_s14, 4  ;;  %s285_s15 = int_to_ptr.vmem [resolvable:$true] %s284_s15 }
   0x8   :  { %340 = vmatpush3.bf16.msra.mxu1 %v339_v11  ;;  %s347_s4 = scalar_lea.vmem %s285_s15, 64  ;;  %p352_p1 = scmp.lt.s32.totalorder %s285_s15, %s285_s15 }
   0x9   :  { %334 = vmatpush3.bf16.msra.mxu0 %v333_v14  ;;  %p348_p0 = scmp.ne.s32.totalorder %s285_s15, %s347_s4  ;;  %p353_p2 = scmp.lt.s32.totalorder %s347_s4, %s347_s4 }
   0xa   :  { %195 = vmatprep.subr.mxu0 %v190_v16 }
   0xb   :  { %327 = vmatmul.mubr.msk.f32.vlgmr.msra.gmra.mrb[0].mxu1 %vm26_vm1, %v100_v15  ;;  %p354_p3 = por %p353_p2, %p352_p1 }
   0xc   :  { %316 = vmatmul.mubr.msk.f32.vlgmr.msra.gmra.mrb[0].mxu0 %vm26_vm1, %v21_v12 }
   0xd   :  { %259 = vmatprep.mubr.f32.mxu0 %v373_v6  ;;  %196 = vmatpush1.msra.mxu0 %v189_v17  ;;  %p355_p4 = pnand %p354_p3, %p348_p0 }
  0xde   :  { %v174_v18 = vpop.f32.mrb[0].mxu1 }
  0xdf   :  { %v178_v19 = vmax.f32 %v174_v18, 1e-24  ;;  %v328_v20 = vpop.f32.mrb[1].mxu1  ;;  %v96_v21 = vpop.f32.mrb[0].mxu0 }
  0xe0   :  { %v317_v22 = vpop.f32.mrb[1].mxu0 }
  0xe1   :  { %345 = vrsqrt.f32 %v178_v19 }
  0xeb   :  { %v346_v23 = vpop.eup %345 }
  0xec   :  { %v180_v25 = vmul.f32 %v346_v23, %v96_v21 }
  0xee   :  { %v188_v26 = vmul.f32 %v294_v24, %v180_v25 }
  0xf0   :  { %295 = vmatmul.mubr.msk.f32.vlgmr.msra.gmra.mrb[2].mxu0 %vm191_vm2, %v188_v26 }
 0x1c3   :  { %v261_v27 = vpop.f32.mrb[2].mxu0 }
 0x1c4   :  { %v263_v28 = vpop.f32.mrb[3].mxu0 }
 0x1c5   :  { %v268_v29 = vcombine.low %v261_v27, %v263_v28 }
 0x1c7   :  { %296 = vst.sshfl [vmem:[#allocation2] sm:$0x33 pattern:$0x76325410] %v268_v29 }
 0x1c8   :  { %358 = shalt.err (!%p355_p4)
}
 0x1c9   :  { %s359_s17 = scalar_lea.hbm %s458_s5, 64 }
 0x1ca   :  { %p360_p5 = scmp.ne.s32.totalorder %s458_s5, %s359_s17  ;;  %p363_p6 = scmp.lt.u32.totalorder %s359_s17, %s458_s5 }
 0x1cc   :  { %p365_p7 = pnand %p363_p6, %p360_p5 }
 0x1ce   :  { %368 = shalt.err (!%p365_p7)
}
 0x1cf   :  { %287 = dma.vmem_to_hbm [thread:$0]  %s285_s15, 64, %s458_s5, [#allocation3]  }
 0x1d0   :  { %369 = dma.done.wait [#allocation3], 64  }
 0x1d1   :  { %370 = vsyncadd [#allocation3], 4294967232 }
 0x1d2   :  { %291 = vsyncpa [#allocation3], 1 }

</bundles_post_ra>
